<compile_context>
chip_gen: v7x
topology: tpu7x:2x2x1
jax: 0.10.0
libtpu: 0.0.40
codegen_flags: <defaults>
</compile_context>

<pallas_src>
import jax
import jax.numpy as jnp
from jax.experimental import pallas as pl
from jax.experimental.pallas import tpu as pltpu


def _fused_affine_kernel(w_ref, b_ref, x_ref, o_ref):
    """o = x @ w_eff.T + b_eff for one batch-row tile (VPU/XLU path).

    w_ref : VMEM (1, K)  folded weight row (N=1, K=5)
    b_ref : SMEM (1,)    folded bias
    x_ref : VMEM (TB, K) native-layout batch tile (rows on sublanes)
    o_ref : VMEM (TB, 1) per-row output
    """
    x = x_ref[...].astype(jnp.float32)            # (TB, K)
    w = w_ref[...].astype(jnp.float32)            # (1, K) -> broadcast over rows
    # One broadcast multiply + one minor-dim (lane) reduce + scalar bias.
    y = jnp.sum(x * w, axis=-1, keepdims=True) + b_ref[0]   # (TB, 1) f32
    o_ref[...] = y.astype(o_ref.dtype)


def linear_model(x, w1, b1, w2, b2, *, max_rows_per_block=8192):
    """y = linear2(linear1(x)) with torch.nn.Linear conventions (W: [out, in])."""
    B, K = x.shape
    N = w2.shape[0]

    # Exact fold of the two affine layers (no nonlinearity in between).
    w1f, b1f = w1.astype(jnp.float32), b1.astype(jnp.float32)
    w2f, b2f = w2.astype(jnp.float32), b2.astype(jnp.float32)
    w_eff = w2f @ w1f                  # [N, K] = [1, 5]
    b_eff = w2f @ b1f + b2f            # [N]    = [1]

    # Batch-row tiling: single whole-array block for small B (always legal,
    # block dims == full dims), otherwise a cdiv grid of 8-divisible tiles
    # with a masked partial last tile.
    if B <= max_rows_per_block:
        tb = B
    else:
        tb = max_rows_per_block        # multiple of 8 (and of 128)
    grid = (pl.cdiv(B, tb),)

    y = pl.pallas_call(
        _fused_affine_kernel,
        out_shape=jax.ShapeDtypeStruct((B, N), x.dtype),
        grid=grid,
        in_specs=[
            pl.BlockSpec((N, K), lambda i: (0, 0)),                  # w_eff (tiny, VMEM)
            pl.BlockSpec(memory_space=pltpu.MemorySpace.SMEM),       # b_eff scalar
            pl.BlockSpec((tb, K), lambda i: (i, 0)),                 # x rows, native layout
        ],
        out_specs=pl.BlockSpec((tb, N), lambda i: (i, 0)),           # y rows
        compiler_params=pltpu.CompilerParams(
            # Batch tiles are independent -> shard/pipeline freely.
            # (On v7x, pltpu.CORE_PARALLEL is a further option if one TC idles.)
            dimension_semantics=("parallel",),
            # Explicit scoped-VMEM budget: covers 4 x (tb x 128-lane-padded)
            # f32 buffers at tb=8192 (~16 MiB) on every generation, including
            # v5e's 16 MiB default and v7x's 64 MiB physical VMEM.
            vmem_limit_bytes=32 * 1024 * 1024,
        ),
    )(w_eff, b_eff, x)

    return y                            # [B, 1]


def _torch_linear_init(key, out_features, in_features, dtype=jnp.float32):
    """Deterministic init mimicking torch.nn.Linear defaults (uniform +-1/sqrt(fan_in))."""
    k_w, k_b = jax.random.split(key)
    bound = 1.0 / jnp.sqrt(jnp.asarray(in_features, dtype))
    w = jax.random.uniform(k_w, (out_features, in_features), dtype,
                           minval=-bound, maxval=bound)
    b = jax.random.uniform(k_b, (out_features,), dtype,
                           minval=-bound, maxval=bound)
    return w, b


if __name__ == "__main__":
    key = jax.random.PRNGKey(0)
    k_x, k_l1, k_l2 = jax.random.split(key, 3)

    w1, b1 = _torch_linear_init(k_l1, 3, 5)   # linear1: 5 -> 3
    w2, b2 = _torch_linear_init(k_l2, 1, 3)   # linear2: 3 -> 1

    fwd = jax.jit(linear_model, static_argnames=("max_rows_per_block",))

    def ref_fwd(xx):
        return (xx @ w1.T + b1) @ w2.T + b2

    # 1) Tiny batch: single exact block.
    B = 8
    x = jax.random.normal(k_x, (B, 5), jnp.float32)
    y = jax.block_until_ready(fwd(x, w1, b1, w2, b2))
    assert y.shape == (B, 1)
    assert jnp.allclose(y, ref_fwd(x), atol=1e-5, rtol=1e-5)

    # 2) Batch not a multiple of 8: single whole-array block (block == full dims).
    B2 = 10
    x2 = jax.random.normal(k_x, (B2, 5), jnp.float32)
    y2 = jax.block_until_ready(fwd(x2, w1, b1, w2, b2))
    assert y2.shape == (B2, 1)
    assert jnp.allclose(y2, ref_fwd(x2), atol=1e-5, rtol=1e-5)

    # 3) Multi-step cdiv grid with a masked partial last tile
    #    (force a small tile to exercise the pipelined/partial path).
    B3 = 300
    x3 = jax.random.normal(k_x, (B3, 5), jnp.float32)
    y3 = jax.block_until_ready(fwd(x3, w1, b1, w2, b2, max_rows_per_block=128))
    assert y3.shape == (B3, 1)
    assert jnp.allclose(y3, ref_fwd(x3), atol=1e-5, rtol=1e-5)

    print("KERNEL_OK")
</pallas_src>

<mosaic_0001>
module attributes {stable_mosaic.version = 11 : i64} {
  func.func @_fused_affine_kernel(%arg0: i32, %arg1: memref<1x5xf32, #tpu.memory_space<vmem>>, %arg2: memref<1xf32, #tpu.memory_space<smem>>, %arg3: memref<8x5xf32, #tpu.memory_space<vmem>>, %arg4: memref<8x1xf32, #tpu.memory_space<vmem>>) attributes {dimension_semantics = [#tpu.dimension_semantics<parallel>], iteration_bounds = array<i64: 1>, scalar_prefetch = 0 : i64, scratch_operands = 0 : i64, tpu.core_type = #tpu.core_type<tc>, window_params = [{pipeline_mode = #tpu.pipeline_mode<synchronous>, transform_indices = @transform_0, window_bounds = array<i64: 1, 5>}, {transform_indices = @transform_1, window_bounds = array<i64: 1>}, {transform_indices = @transform_2, window_bounds = array<i64: 8, 5>}, {transform_indices = @transform_3, window_bounds = array<i64: 8, 1>}]} {
    %c0 = arith.constant 0 : index
    %c0_0 = arith.constant 0 : index
    %0 = vector.load %arg3[%c0, %c0_0] : memref<8x5xf32, #tpu.memory_space<vmem>>, vector<8x5xf32>
    %c0_1 = arith.constant 0 : index
    %c0_2 = arith.constant 0 : index
    %1 = vector.load %arg1[%c0_1, %c0_2] : memref<1x5xf32, #tpu.memory_space<vmem>>, vector<1x5xf32>
    %2 = vector.broadcast %1 : vector<1x5xf32> to vector<8x5xf32>
    %3 = arith.mulf %0, %2 : vector<8x5xf32>
    %cst = arith.constant dense<0.000000e+00> : vector<8xf32>
    %4 = vector.multi_reduction <add>, %3, %cst [1] : vector<8x5xf32> to vector<8xf32>
    %5 = vector.shape_cast %4 : vector<8xf32> to vector<8x1xf32>
    %c0_3 = arith.constant 0 : index
    %6 = memref.load %arg2[%c0_3] : memref<1xf32, #tpu.memory_space<smem>>
    %7 = vector.broadcast %6 : f32 to vector<8x1xf32>
    %8 = arith.addf %5, %7 : vector<8x1xf32>
    %c0_4 = arith.constant 0 : index
    %c0_5 = arith.constant 0 : index
    %9 = vector.load %arg4[%c0_4, %c0_5] : memref<8x1xf32, #tpu.memory_space<vmem>>, vector<8x1xf32>
    tpu.vector_store %arg4[%c0_4, %c0_5], %8 {strides = array<i32>} : memref<8x1xf32, #tpu.memory_space<vmem>>, vector<8x1xf32>,
    return
  }
  func.func @transform_0(%arg0: i32) -> (i32, i32) {
    %c0_i32 = arith.constant 0 : i32
    %c0_i32_0 = arith.constant 0 : i32
    %c0_i32_1 = arith.constant 0 : i32
    return %c0_i32, %c0_i32_0 : i32, i32
  }
  func.func @transform_1(%arg0: i32) -> i32 {
    %c0_i32 = arith.constant 0 : i32
    %c0_i32_0 = arith.constant 0 : i32
    return %c0_i32 : i32
  }
  func.func @transform_2(%arg0: i32) -> (i32, i32) {
    %c0_i32 = arith.constant 0 : i32
    %c0_i32_0 = arith.constant 0 : i32
    return %arg0, %c0_i32 : i32, i32
  }
  func.func @transform_3(%arg0: i32) -> (i32, i32) {
    %c0_i32 = arith.constant 0 : i32
    %c0_i32_0 = arith.constant 0 : i32
    return %arg0, %c0_i32 : i32, i32
  }
}

</mosaic_0001>

<bundles_post_ra>
// kernel: linear_model.1
= control target key start
LH: loop header
LB: loop body
LE: loop exit
PB: predicated region body
PF: predicated region fallthrough
CT: control target
= control target key end

     0   :  { %vm24_vm0 = vcmask 39936   ;;  %vm31_vm1 = vcmask 7168   ;;  %s70_s0 = inlined_call_operand.vmem [shape: f32[1,5], index: 0, kind: input, shape index: {}]   ;;  %s71_s2 = inlined_call_operand.vmem [shape: f32[8,5], index: 2, kind: input, shape index: {}]   ;;  %s72_s1 = inlined_call_operand.<no memory space> [shape: f32[1], index: 1, kind: input, shape index: {}]   ;;  %s73_s3 = inlined_call_operand.vmem [shape: f32[8,1], index: 3, kind: output, shape index: {}]  }
   0x1   :  { %v15_v0 = vld [vmem:[%s71_s2] sm:$0xff]  ;;  %v29_v4 = vstv %s72_s1 }
   0x2   :  { %v37_v1 = vld [vmem:[%s70_s0] ss:$0 sm:$0xff] }
   0x3   :  { %v23_v2 = vmul.f32 %v37_v1, %v15_v0 }
   0x5   :  { %v25_v3 = vsel %vm24_vm0, %v23_v2, 0.0 }
   0x6   :  { %26 = vadd.xlane.f32.xlu0 %v25_v3 }
  0x93   :  { %v27_v5 = vpop.xlane.xlu0 %26 }
  0x94   :  { %v30_v6 = vadd.f32 %v29_v4, %v27_v5 }
  0x96   :  { %32 = vst.msk [vmem:[%s73_s3] sm:$0xff] %vm31_vm1, %v30_v6 }

</bundles_post_ra>
